<compile_context>
chip_gen: v7x
topology: tpu7x:2x2x1
jax: 0.10.0
libtpu: 0.0.40
codegen_flags: <defaults>
</compile_context>

<pallas_src>
import functools

import jax
import jax.numpy as jnp
from jax.experimental import pallas as pl
from jax.experimental.pallas import tpu as pltpu

N_PAD = 8      # >= number of graph nodes (3); sublane-aligned
F_LANE = 128   # lane-dense last dim for the parameter slab and the output


# ----------------------------------------------------------------------------
# Graph construction (host-side glue, mirrors build_graph_from_logs)
# ----------------------------------------------------------------------------
LOGS = [
    ('2025-05-23 00:00:00', 'Running', '设备正常运行'),
    ('2025-05-23 00:05:00', 'Paused', '设备暂停'),
    ('2025-05-23 00:10:00', 'Running', '设备恢复运行'),
    ('2025-05-23 00:15:00', 'Restarting', '设备重启'),
    ('2025-05-23 00:20:00', 'Running', '设备正常运行'),
]


def build_graph_from_logs(logs):
    # Deterministic state ordering (insertion order instead of python set).
    state_to_index = {}
    for _, state, _ in logs:
        if state not in state_to_index:
            state_to_index[state] = len(state_to_index)
    n = len(state_to_index)
    node_features = [[0.0] for _ in range(n)]
    for _, state, _ in logs:
        node_features[state_to_index[state]][0] += 1.0
    edges = []
    for i in range(len(logs) - 1):
        edges.append([state_to_index[logs[i][1]], state_to_index[logs[i + 1][1]]])
    x = jnp.asarray(node_features, dtype=jnp.float32)      # [N, 1]
    edge_index = jnp.asarray(edges, dtype=jnp.int32).T      # [2, E]
    return x, edge_index


# ----------------------------------------------------------------------------
# Init-time parameter packing: one (8, 128) f32 slab, resident across the grid
#   row 0: W1[0, :hidden]     row 1: b1[:hidden]
#   row 2: W2[:hidden, 0]     row 3, col 0: b2[0]
# Invariant (documented per review): num_features == 1 and hidden <= 128, with
# all unused slab entries zero -- the kernel's F==1 outer-product / lane-reduce
# paths rely on this.
# ----------------------------------------------------------------------------
def pack_params(params):
    f, h = params["w1"].shape
    assert f == 1, "F==1 fast path: pack_params only supports num_features == 1"
    assert h <= F_LANE
    slab = jnp.zeros((8, F_LANE), jnp.float32)
    slab = slab.at[0, :h].set(params["w1"][0])
    slab = slab.at[1, :h].set(params["b1"])
    slab = slab.at[2, :h].set(params["w2"][:, 0])
    slab = slab.at[3, 0].set(params["b2"][0])
    return slab


# ----------------------------------------------------------------------------
# Pallas kernel: per-graph adjacency build + both GCN layers
# ----------------------------------------------------------------------------
def gae_kernel(src_ref, dst_ref,          # SMEM scalar prefetch: (G, E) edges
               x_ref, p_ref,              # VMEM: (1, N_PAD, 1) x, (8,128) slab
               out_ref,                   # VMEM: (1, N_PAD, 128)
               *, num_nodes, num_edges):
    g = pl.program_id(0)

    # ---- unnormalized adjacency-with-self-loops, built in vregs -------------
    # adj[dst, src] = (# edges src -> dst) + (1 if dst == src < num_nodes)
    row = jax.lax.broadcasted_iota(jnp.int32, (N_PAD, N_PAD), 0)   # dst ids
    col = jax.lax.broadcasted_iota(jnp.int32, (N_PAD, N_PAD), 1)   # src ids
    eye = ((row == col) & (row < num_nodes)).astype(jnp.float32)   # self loops
    adj = eye
    for e in range(num_edges):            # unrolled: E is tiny and static
        s = src_ref[g, e]
        d = dst_ref[g, e]
        adj = adj + ((row == d) & (col == s)).astype(jnp.float32)

    # deg[i] = in-degree incl. self loop = row-sum of adj
    deg = jnp.sum(adj, axis=1, keepdims=True)                       # (N_PAD, 1)
    dinv = jnp.where(deg > 0.0, jax.lax.rsqrt(jnp.maximum(deg, 1.0)), 0.0)
    # dinv as a row vector via a masked sublane reduce (no transpose needed).
    dinv_row = jnp.sum(dinv * eye, axis=0, keepdims=True)           # (1, N_PAD)
    # Fold the normalization into the adjacency once (review opt): all (8,8).
    adj_n = (dinv * adj) * dinv_row                                 # A_norm

    # ---- parameter slab slices (cols >= hidden are zero by construction) ----
    w1_row = p_ref[0:1, :]     # (1, 128)
    b1_row = p_ref[1:2, :]     # (1, 128)
    w2_row = p_ref[2:3, :]     # (1, 128)
    b2_row = p_ref[3:4, :]     # (1, 128) -- only col 0 nonzero

    # ---- encoder: Z = A_norm @ (X @ W1) + b1 --------------------------------
    # F == 1: X @ W1 is a broadcast outer product (pure VPU).
    x_col = x_ref[0, :, :]                                          # (N_PAD, 1)
    xw = x_col * w1_row                                             # (N_PAD, 128)
    z = jnp.dot(adj_n, xw, preferred_element_type=jnp.float32) + b1_row

    # ---- decoder: out = A_norm @ (Z @ W2) + b2 ------------------------------
    # Z @ W2 (H -> 1) as elementwise multiply + lane reduction; the reduce is
    # pushed after the adjacency matmul (linear, so order is equivalent).
    zw = z * w2_row                                                 # (N_PAD, 128)
    azw = jnp.dot(adj_n, zw, preferred_element_type=jnp.float32)    # (N_PAD, 128)
    out_col = jnp.sum(azw, axis=1, keepdims=True)                   # (N_PAD, 1)
    # Lane-dense store; column 0 carries the answer, the wrapper slices it.
    out_ref[0, :, :] = out_col + b2_row


# ----------------------------------------------------------------------------
# Single-dispatch batched forward: pad x -> one pallas_call -> slice
# ----------------------------------------------------------------------------
@jax.jit
def gnn_autoencoder_forward(x_batch, edge_src, edge_dst, param_slab):
    num_graphs, n, f = x_batch.shape
    num_edges = edge_src.shape[1]
    assert f == 1, "F==1 fast path (see pack_params invariant)"
    assert n <= N_PAD

    x_p = jnp.zeros((num_graphs, N_PAD, 1), jnp.float32).at[:, :n, :].set(x_batch)

    kernel = functools.partial(gae_kernel, num_nodes=n, num_edges=num_edges)

    # index_map signature: (grid index, *scalar-prefetch refs) -> block index
    out_p = pl.pallas_call(
        kernel,
        out_shape=jax.ShapeDtypeStruct((num_graphs, N_PAD, F_LANE), jnp.float32),
        grid_spec=pltpu.PrefetchScalarGridSpec(
            num_scalar_prefetch=2,              # edge_src, edge_dst -> SMEM
            grid=(num_graphs,),                 # one graph per grid step
            in_specs=[
                pl.BlockSpec((1, N_PAD, 1), lambda g, src, dst: (g, 0, 0)),   # x
                pl.BlockSpec((8, F_LANE), lambda g, src, dst: (0, 0)),        # params (resident)
            ],
            out_specs=pl.BlockSpec((1, N_PAD, F_LANE), lambda g, src, dst: (g, 0, 0)),
        ),
        compiler_params=pltpu.CompilerParams(
            dimension_semantics=("parallel",)),  # v7x: shard batch over 2 TCs
    )(edge_src, edge_dst, x_p, param_slab)

    return out_p[:, :n, 0:f]


# ----------------------------------------------------------------------------
# Pure-JAX reference (PyG-style gcn_norm), used once for the correctness check
# ----------------------------------------------------------------------------
def gcn_norm_dense(edge_index, num_nodes):
    src, dst = edge_index[0], edge_index[1]
    loop = jnp.arange(num_nodes, dtype=edge_index.dtype)
    row = jnp.concatenate([src, loop])
    col = jnp.concatenate([dst, loop])
    w = jnp.ones_like(row, dtype=jnp.float32)
    deg = jnp.zeros((num_nodes,), jnp.float32).at[col].add(w)
    dinv = jnp.where(deg > 0, jax.lax.rsqrt(deg), 0.0)
    norm = dinv[row] * w * dinv[col]
    a = jnp.zeros((num_nodes, num_nodes), jnp.float32).at[col, row].add(norm)
    return a


def reference_forward(x, edge_index, params):
    a = gcn_norm_dense(edge_index, x.shape[0])
    z = a @ (x @ params["w1"]) + params["b1"]
    return a @ (z @ params["w2"]) + params["b2"]


if __name__ == "__main__":
    x0, edge_index0 = build_graph_from_logs(LOGS)   # x0: [3, 1], edges: [2, 4]
    n, num_features = x0.shape
    num_edges = edge_index0.shape[1]
    hidden = 16

    key = jax.random.PRNGKey(0)
    k1, k2, k3, k4, k5 = jax.random.split(key, 5)
    params = {
        "w1": jax.random.normal(k1, (num_features, hidden), jnp.float32)
        * (1.0 / jnp.sqrt(num_features)),
        "b1": 0.1 * jax.random.normal(k3, (hidden,), jnp.float32),
        "w2": jax.random.normal(k2, (hidden, num_features), jnp.float32)
        * (1.0 / jnp.sqrt(hidden)),
        "b2": 0.1 * jax.random.normal(k4, (num_features,), jnp.float32),
    }
    param_slab = pack_params(params)                 # once, at init

    # Batch of G graphs processed in ONE kernel launch: graph 0 is the log
    # graph; graphs 1..3 share its size but have random features / edges
    # (exercises the per-graph scalar-prefetched edge lists).
    G = 4
    xs = [x0]
    srcs = [edge_index0[0]]
    dsts = [edge_index0[1]]
    for i in range(1, G):
        kk = jax.random.fold_in(k5, i)
        ka, kb, kc = jax.random.split(kk, 3)
        xs.append(jax.random.uniform(ka, (n, num_features), jnp.float32, 0.0, 5.0))
        srcs.append(jax.random.randint(kb, (num_edges,), 0, n, jnp.int32))
        dsts.append(jax.random.randint(kc, (num_edges,), 0, n, jnp.int32))
    x_batch = jnp.stack(xs)             # (G, 3, 1)
    edge_src = jnp.stack(srcs)          # (G, 4)
    edge_dst = jnp.stack(dsts)          # (G, 4)

    out = gnn_autoencoder_forward(x_batch, edge_src, edge_dst, param_slab)
    out = jax.block_until_ready(out)
    assert out.shape == (G, n, num_features), out.shape

    for g in range(G):
        ei = jnp.stack([edge_src[g], edge_dst[g]])
        ref = reference_forward(x_batch[g], ei, params)
        assert jnp.allclose(out[g], ref, atol=1e-4, rtol=1e-4), (g, out[g], ref)

    print("KERNEL_OK")
</pallas_src>

<mosaic_0001>
module attributes {stable_mosaic.version = 11 : i64} {
  func.func @gae_kernel(%arg0: i32, %arg1: memref<4x4xi32, #tpu.memory_space<smem>>, %arg2: memref<4x4xi32, #tpu.memory_space<smem>>, %arg3: memref<1x8x1xf32, #tpu.memory_space<vmem>>, %arg4: memref<8x128xf32, #tpu.memory_space<vmem>>, %arg5: memref<1x8x128xf32, #tpu.memory_space<vmem>>) attributes {dimension_semantics = [#tpu.dimension_semantics<parallel>], iteration_bounds = array<i64: 4>, scalar_prefetch = 2 : i64, scratch_operands = 0 : i64, tpu.core_type = #tpu.core_type<tc>, window_params = [{transform_indices = @transform_0, window_bounds = array<i64: 1, 8, 1>}, {pipeline_mode = #tpu.pipeline_mode<synchronous>, transform_indices = @transform_1, window_bounds = array<i64: 8, 128>}, {transform_indices = @transform_2, window_bounds = array<i64: 1, 8, 128>}]} {
    %0 = tpu.iota {dimensions = array<i32: 0>} : vector<8x8xi32>
    %1 = tpu.iota {dimensions = array<i32: 1>} : vector<8x8xi32>
    %2 = arith.cmpi eq, %0, %1 : vector<8x8xi32>
    %c3_i32 = arith.constant 3 : i32
    %3 = vector.broadcast %c3_i32 : i32 to vector<8x8xi32>
    %4 = arith.cmpi slt, %0, %3 : vector<8x8xi32>
    %5 = arith.andi %2, %4 : vector<8x8xi1>
    %6 = arith.extui %5 : vector<8x8xi1> to vector<8x8xi32>
    %7 = arith.sitofp %6 : vector<8x8xi32> to vector<8x8xf32>
    %8 = arith.index_cast %arg0 : i32 to index
    %c0 = arith.constant 0 : index
    %9 = memref.load %arg1[%8, %c0] : memref<4x4xi32, #tpu.memory_space<smem>>
    %10 = arith.index_cast %arg0 : i32 to index
    %c0_0 = arith.constant 0 : index
    %11 = memref.load %arg2[%10, %c0_0] : memref<4x4xi32, #tpu.memory_space<smem>>
    %12 = vector.broadcast %11 : i32 to vector<8x8xi32>
    %13 = arith.cmpi eq, %0, %12 : vector<8x8xi32>
    %14 = vector.broadcast %9 : i32 to vector<8x8xi32>
    %15 = arith.cmpi eq, %1, %14 : vector<8x8xi32>
    %16 = arith.andi %13, %15 : vector<8x8xi1>
    %17 = arith.extui %16 : vector<8x8xi1> to vector<8x8xi32>
    %18 = arith.sitofp %17 : vector<8x8xi32> to vector<8x8xf32>
    %19 = arith.addf %7, %18 : vector<8x8xf32>
    %20 = arith.index_cast %arg0 : i32 to index
    %c1 = arith.constant 1 : index
    %21 = memref.load %arg1[%20, %c1] : memref<4x4xi32, #tpu.memory_space<smem>>
    %22 = arith.index_cast %arg0 : i32 to index
    %c1_1 = arith.constant 1 : index
    %23 = memref.load %arg2[%22, %c1_1] : memref<4x4xi32, #tpu.memory_space<smem>>
    %24 = vector.broadcast %23 : i32 to vector<8x8xi32>
    %25 = arith.cmpi eq, %0, %24 : vector<8x8xi32>
    %26 = vector.broadcast %21 : i32 to vector<8x8xi32>
    %27 = arith.cmpi eq, %1, %26 : vector<8x8xi32>
    %28 = arith.andi %25, %27 : vector<8x8xi1>
    %29 = arith.extui %28 : vector<8x8xi1> to vector<8x8xi32>
    %30 = arith.sitofp %29 : vector<8x8xi32> to vector<8x8xf32>
    %31 = arith.addf %19, %30 : vector<8x8xf32>
    %32 = arith.index_cast %arg0 : i32 to index
    %c2 = arith.constant 2 : index
    %33 = memref.load %arg1[%32, %c2] : memref<4x4xi32, #tpu.memory_space<smem>>
    %34 = arith.index_cast %arg0 : i32 to index
    %c2_2 = arith.constant 2 : index
    %35 = memref.load %arg2[%34, %c2_2] : memref<4x4xi32, #tpu.memory_space<smem>>
    %36 = vector.broadcast %35 : i32 to vector<8x8xi32>
    %37 = arith.cmpi eq, %0, %36 : vector<8x8xi32>
    %38 = vector.broadcast %33 : i32 to vector<8x8xi32>
    %39 = arith.cmpi eq, %1, %38 : vector<8x8xi32>
    %40 = arith.andi %37, %39 : vector<8x8xi1>
    %41 = arith.extui %40 : vector<8x8xi1> to vector<8x8xi32>
    %42 = arith.sitofp %41 : vector<8x8xi32> to vector<8x8xf32>
    %43 = arith.addf %31, %42 : vector<8x8xf32>
    %44 = arith.index_cast %arg0 : i32 to index
    %c3 = arith.constant 3 : index
    %45 = memref.load %arg1[%44, %c3] : memref<4x4xi32, #tpu.memory_space<smem>>
    %46 = arith.index_cast %arg0 : i32 to index
    %c3_3 = arith.constant 3 : index
    %47 = memref.load %arg2[%46, %c3_3] : memref<4x4xi32, #tpu.memory_space<smem>>
    %48 = vector.broadcast %47 : i32 to vector<8x8xi32>
    %49 = arith.cmpi eq, %0, %48 : vector<8x8xi32>
    %50 = vector.broadcast %45 : i32 to vector<8x8xi32>
    %51 = arith.cmpi eq, %1, %50 : vector<8x8xi32>
    %52 = arith.andi %49, %51 : vector<8x8xi1>
    %53 = arith.extui %52 : vector<8x8xi1> to vector<8x8xi32>
    %54 = arith.sitofp %53 : vector<8x8xi32> to vector<8x8xf32>
    %55 = arith.addf %43, %54 : vector<8x8xf32>
    %cst = arith.constant dense<0.000000e+00> : vector<8xf32>
    %56 = vector.multi_reduction <add>, %55, %cst [1] : vector<8x8xf32> to vector<8xf32>
    %57 = vector.shape_cast %56 : vector<8xf32> to vector<8x1xf32>
    %cst_4 = arith.constant 0.000000e+00 : f32
    %58 = vector.broadcast %cst_4 : f32 to vector<8x1xf32>
    %59 = arith.cmpf ogt, %57, %58 : vector<8x1xf32>
    %cst_5 = arith.constant 1.000000e+00 : f32
    %60 = vector.broadcast %cst_5 : f32 to vector<8x1xf32>
    %61 = arith.maximumf %57, %60 : vector<8x1xf32>
    %62 = math.rsqrt %61 : vector<8x1xf32>
    %cst_6 = arith.constant 0.000000e+00 : f32
    %63 = vector.broadcast %cst_6 : f32 to vector<8x1xf32>
    %64 = arith.select %59, %62, %63 : vector<8x1xi1>, vector<8x1xf32>
    %65 = vector.broadcast %64 : vector<8x1xf32> to vector<8x8xf32>
    %66 = arith.mulf %65, %7 : vector<8x8xf32>
    %cst_7 = arith.constant dense<0.000000e+00> : vector<8xf32>
    %67 = vector.multi_reduction <add>, %66, %cst_7 [0] : vector<8x8xf32> to vector<8xf32>
    %68 = vector.shape_cast %67 : vector<8xf32> to vector<1x8xf32>
    %69 = vector.broadcast %64 : vector<8x1xf32> to vector<8x8xf32>
    %70 = arith.mulf %69, %55 : vector<8x8xf32>
    %71 = vector.broadcast %68 : vector<1x8xf32> to vector<8x8xf32>
    %72 = arith.mulf %70, %71 : vector<8x8xf32>
    %c0_8 = arith.constant 0 : index
    %c0_9 = arith.constant 0 : index
    %73 = vector.load %arg4[%c0_8, %c0_9] : memref<8x128xf32, #tpu.memory_space<vmem>>, vector<1x128xf32>
    %c1_10 = arith.constant 1 : index
    %c0_11 = arith.constant 0 : index
    %74 = vector.load %arg4[%c1_10, %c0_11] : memref<8x128xf32, #tpu.memory_space<vmem>>, vector<1x128xf32>
    %c2_12 = arith.constant 2 : index
    %c0_13 = arith.constant 0 : index
    %75 = vector.load %arg4[%c2_12, %c0_13] : memref<8x128xf32, #tpu.memory_space<vmem>>, vector<1x128xf32>
    %c3_14 = arith.constant 3 : index
    %c0_15 = arith.constant 0 : index
    %76 = vector.load %arg4[%c3_14, %c0_15] : memref<8x128xf32, #tpu.memory_space<vmem>>, vector<1x128xf32>
    %c0_16 = arith.constant 0 : index
    %c0_17 = arith.constant 0 : index
    %c0_18 = arith.constant 0 : index
    %77 = vector.load %arg3[%c0_16, %c0_17, %c0_18] : memref<1x8x1xf32, #tpu.memory_space<vmem>>, vector<1x8x1xf32>
    %78 = vector.shape_cast %77 : vector<1x8x1xf32> to vector<8x1xf32>
    %79 = vector.broadcast %78 : vector<8x1xf32> to vector<8x128xf32>
    %80 = vector.broadcast %73 : vector<1x128xf32> to vector<8x128xf32>
    %81 = arith.mulf %79, %80 : vector<8x128xf32>
    %cst_19 = arith.constant dense<0.000000e+00> : vector<8x128xf32>
    %82 = tpu.matmul %72, %81, %cst_19 {dimension_numbers = #tpu.dot_dimension_numbers<[1], [0], [0], [1], [0, 0, 1, 1], [], []>} : vector<8x8xf32>, vector<8x128xf32>, vector<8x128xf32> -> vector<8x128xf32>
    %83 = vector.broadcast %74 : vector<1x128xf32> to vector<8x128xf32>
    %84 = arith.addf %82, %83 : vector<8x128xf32>
    %85 = vector.broadcast %75 : vector<1x128xf32> to vector<8x128xf32>
    %86 = arith.mulf %84, %85 : vector<8x128xf32>
    %cst_20 = arith.constant dense<0.000000e+00> : vector<8x128xf32>
    %87 = tpu.matmul %72, %86, %cst_20 {dimension_numbers = #tpu.dot_dimension_numbers<[1], [0], [0], [1], [0, 0, 1, 1], [], []>} : vector<8x8xf32>, vector<8x128xf32>, vector<8x128xf32> -> vector<8x128xf32>
    %cst_21 = arith.constant dense<0.000000e+00> : vector<8xf32>
    %88 = vector.multi_reduction <add>, %87, %cst_21 [1] : vector<8x128xf32> to vector<8xf32>
    %89 = vector.shape_cast %88 : vector<8xf32> to vector<8x1xf32>
    %90 = vector.broadcast %89 : vector<8x1xf32> to vector<8x128xf32>
    %91 = vector.broadcast %76 : vector<1x128xf32> to vector<8x128xf32>
    %92 = arith.addf %90, %91 : vector<8x128xf32>
    %c0_22 = arith.constant 0 : index
    %c0_23 = arith.constant 0 : index
    %c0_24 = arith.constant 0 : index
    %93 = vector.load %arg5[%c0_22, %c0_23, %c0_24] : memref<1x8x128xf32, #tpu.memory_space<vmem>>, vector<1x8x128xf32>
    %94 = vector.shape_cast %93 : vector<1x8x128xf32> to vector<8x128xf32>
    %95 = vector.shape_cast %92 : vector<8x128xf32> to vector<1x8x128xf32>
    tpu.vector_store %arg5[%c0_22, %c0_23, %c0_24], %95 {strides = array<i32>} : memref<1x8x128xf32, #tpu.memory_space<vmem>>, vector<1x8x128xf32>,
    return
  }
  func.func @transform_0(%arg0: i32, %arg1: memref<4x4xi32, #tpu.memory_space<smem>>, %arg2: memref<4x4xi32, #tpu.memory_space<smem>>) -> (i32, i32, i32) {
    %c0_i32 = arith.constant 0 : i32
    %c0_i32_0 = arith.constant 0 : i32
    %c0_i32_1 = arith.constant 0 : i32
    return %arg0, %c0_i32, %c0_i32_0 : i32, i32, i32
  }
  func.func @transform_1(%arg0: i32, %arg1: memref<4x4xi32, #tpu.memory_space<smem>>, %arg2: memref<4x4xi32, #tpu.memory_space<smem>>) -> (i32, i32) {
    %c0_i32 = arith.constant 0 : i32
    %c0_i32_0 = arith.constant 0 : i32
    %c0_i32_1 = arith.constant 0 : i32
    return %c0_i32, %c0_i32_0 : i32, i32
  }
  func.func @transform_2(%arg0: i32, %arg1: memref<4x4xi32, #tpu.memory_space<smem>>, %arg2: memref<4x4xi32, #tpu.memory_space<smem>>) -> (i32, i32, i32) {
    %c0_i32 = arith.constant 0 : i32
    %c0_i32_0 = arith.constant 0 : i32
    %c0_i32_1 = arith.constant 0 : i32
    return %arg0, %c0_i32, %c0_i32_0 : i32, i32, i32
  }
}

</mosaic_0001>

<bundles_post_ra>
// kernel: gnn_autoencoder_forward.1
= control target key start
LH: loop header
LB: loop body
LE: loop exit
PB: predicated region body
PF: predicated region fallthrough
CT: control target
= control target key end

     0   :  { %s616_s0 = inlined_call_operand.vmem [shape: s32[4,4], index: 0, kind: input, shape index: {}]   ;;  %s617_s2 = inlined_call_operand.vmem [shape: f32[4,8,1], index: 2, kind: input, shape index: {}]   ;;  %s618_s3 = inlined_call_operand.vmem [shape: f32[8,128], index: 3, kind: input, shape index: {}]   ;;  %s619_s4 = inlined_call_operand.vmem [shape: f32[4,8,128], index: 4, kind: output, shape index: {}]   ;;  %s620_s1 = inlined_call_operand.vmem [shape: s32[4,4], index: 1, kind: input, shape index: {}]  }
   0x1   :  { %s9_s17 = sshll.u32 %s616_s0, 4  ;;  %s13_s20 = sshll.u32 %s620_s1, 4  ;;  %s10_s17 = int_to_ptr.vmem [resolvable:$true] %s9_s17  ;;  %s14_s20 = int_to_ptr.vmem [resolvable:$true] %s13_s20 }
   0x2   :  { %s501_s21 = scalar_lea.vmem %s10_s17, 64  ;;  %p506_p1 = scmp.lt.s32.totalorder %s10_s17, %s10_s17 }
   0x3   :  { %p502_p0 = scmp.ne.s32.totalorder %s10_s17, %s501_s21  ;;  %p507_p2 = scmp.lt.s32.totalorder %s501_s21, %s501_s21 }
   0x5   :  { %p508_p3 = por %p507_p2, %p506_p1 }
   0x7   :  { %p509_p4 = pnand %p508_p3, %p502_p0 }
   0x9   :  { %512 = shalt.err (!%p509_p4)  }
   0xa   :  { %s535_s22 = smov [#allocation3]   ;;  %s513_s23 = scalar_lea.vmem %s14_s20, 64 }
   0xb   :  { %12 = dma.vmem_to_smem %s10_s17, 64, %s535_s22, [#allocation2] }
   0xc   :  { %p514_p5 = scmp.ne.s32.totalorder %s14_s20, %s513_s23  ;;  %p518_p6 = scmp.lt.s32.totalorder %s14_s20, %s14_s20 }
   0xd   :  { %p519_p7 = scmp.lt.s32.totalorder %s513_s23, %s513_s23 }
   0xf   :  { %p520_p8 = por %p519_p7, %p518_p6 }
  0x11   :  { %p521_p9 = pnand %p520_p8, %p514_p5 }
  0x13   :  { %524 = shalt.err (!%p521_p9)  }
  0x14   :  { %s536_s0 = smov [#allocation4]  }
  0x15   :  { %16 = dma.vmem_to_smem %s14_s20, 64, %s536_s0, [#allocation2] }
  0x16   :  { %529 = dma.done.wait [#allocation2], 128 }
  0x17   :  { %530 = vsyncadd [#allocation2], 4294967168 }
  0x18   :  { %18 = sfence }
  0x19   :  { %s571_s1 = smov 0  }
  0x1a LB: > { %s577_s24 = sadd.s32 4294967295, %s533_s1   ;;  %p454_p10 = scmp.ge.s32.totalorder %s533_s1, 1  ;;  %s533_s1 = sphi %s571_s1, %s24_s1  }
  0x1b   : > { %p123_p11 = scmp.lt.s32.totalorder %s533_s1, 5 }
  0x1d   : > { %p124_p12 = pnand %p454_p10, %p123_p11 }
  0x1e   : > { %v151_v0 = vlaneseq (!%p124_p12)  ;;  %s458_s25 = sshll.u32 (!%p124_p12), %s577_s24, 7  ;;  %v537_v1 = vmov (!%p124_p12), 0   ;;  %v538_v2 = vmov (!%p124_p12), 0.0   ;;  %vm204_vm15 = vcmask (!%p124_p12), 64512   ;;  %p143_p13 = scmp.lt.s32.totalorder (!%p124_p12), %s577_s24, 3 }
  0x1f   : > { %127 = sbr.rel (%p124_p12) target bundleno = 798 (0x31e), region = 28  ;;  %s161_s26 = sld [smem:[#allocation3 + %s458_s25]] (!%p124_p12)  ;;  %498 = vset.pattern.permute.xlu0 (!%p124_p12), %v537_v1  ;;  %475 = vmatprep.subr.mxu0 (!%p124_p12), %v538_v2  ;;  %v463_v26 = vld [vmem:[%s618_s3] ss:$0 sm:$0xff] (!%p124_p12)  ;;  %v464_v41 = vld [vmem:[%s618_s3 + $0x1] ss:$0 sm:$0xff] (!%p124_p12) }
  0x20   : > { %s162_s27 = sld [smem:[#allocation4 + %s458_s25]] (!%p124_p12)  ;;  %v152_v3 = vshrl.u32 (!%p124_p12), %v151_v0, 7  ;;  %v154_v4 = vand.u32 (!%p124_p12), 127, %v151_v0  ;;  %s171_s28 = sadd.s32 (!%p124_p12), 1, %s458_s25  ;;  %480 = vmatprep.subr.mxu1 (!%p124_p12), %v538_v2  ;;  %v466_v43 = vld [vmem:[%s618_s3 + $0x2] ss:$0 sm:$0xff] (!%p124_p12) }
  0x21   : > { %s182_s29 = sadd.s32 (!%p124_p12), 2, %s458_s25  ;;  %s172_s30 = sld [smem:[#allocation3 + %s171_s28]] (!%p124_p12)  ;;  %v468_v49 = vld [vmem:[%s618_s3 + $0x3] ss:$0 sm:$0xff] (!%p124_p12) }
  0x22   : > { %s173_s5 = sld [smem:[#allocation4 + %s171_s28]] (!%p124_p12)  ;;  %vm155_vm0 = vcmp.eq.s32.totalorder (!%p124_p12), %v152_v3, %v154_v4  ;;  %vm156_vm1 = vcmp.lt.s32.totalorder (!%p124_p12), %v152_v3, 3  ;;  %s193_s8 = sadd.s32 (!%p124_p12), 3, %s458_s25 }
  0x23   : > { %s183_s6 = sld [smem:[#allocation3 + %s182_s29]] (!%p124_p12)  ;;  %vm157_vm2 = vmand (!%p124_p12), %vm155_vm0, %vm156_vm1  ;;  %vm539_vm0 = vmmov (!%p124_p12), 0  }
  0x24   : > { %s184_s7 = sld [smem:[#allocation4 + %s182_s29]] (!%p124_p12)  ;;  %v457_v7 = vsel (!%p124_p12), %vm157_vm2, 1.0, %v538_v2  ;;  %477 = vmatprep.mubr.msk.f32.mxu0 (!%p124_p12), %vm539_vm0, %v538_v2  ;;  %482 = vmatprep.mubr.msk.f32.mxu1 (!%p124_p12), %vm539_vm0, %v538_v2 }
  0x25   : > { %s194_s9 = sld [smem:[#allocation3 + %s193_s8]] (!%p124_p12)  ;;  %v165_v6 = vstv (!%p124_p12), %s161_s26 }
  0x26   : > { %s195_s10 = sld [smem:[#allocation4 + %s193_s8]]  ;;  %v163_v5 = vstv %s162_s27  ;;  %vm166_vm4 = vcmp.eq.s32.totalorder %v154_v4, %v165_v6  ;;  %s622_s24 = smov (!%p143_p13, %s577_s24), 3 }
  0x27   : > { %vm164_vm3 = vcmp.eq.s32.totalorder %v152_v3, %v163_v5  ;;  %v176_v9 = vstv %s172_s30  ;;  %s455_s11 = sshll.u32 %s622_s24, 3 }
  0x28   : > { %vm167_vm5 = vmand %vm164_vm3, %vm166_vm4  ;;  %v174_v8 = vstv %s173_s5  ;;  %vm177_vm7 = vcmp.eq.s32.totalorder %v154_v4, %v176_v9  ;;  %s146_s14 = scalar_lea.vmem %s617_s2, %s455_s11  ;;  %s150_s25 = scalar_lea.vmem %s619_s4, %s455_s11 }
  0x29   : > { %v459_v10 = vsel %vm167_vm5, 1.0, %v538_v2  ;;  %vm175_vm6 = vcmp.eq.s32.totalorder %v152_v3, %v174_v8  ;;  %v187_v13 = vstv %s183_s6  ;;  %v226_v23 = vld [vmem:[%s146_s14] sm:$0xff] }
  0x2a   : > { %v185_v11 = vstv %s184_s7  ;;  %v170_v12 = vadd.f32 %v459_v10, %v457_v7  ;;  %vm178_vm8 = vmand %vm175_vm6, %vm177_vm7  ;;  %vm188_vm10 = vcmp.eq.s32.totalorder %v154_v4, %v187_v13 }
  0x2b   : > { %vm186_vm9 = vcmp.eq.s32.totalorder %v152_v3, %v185_v11  ;;  %v460_v14 = vsel %vm178_vm8, 1.0, %v538_v2  ;;  %v198_v16 = vstv %s194_s9 }
  0x2c   : > { %v196_v15 = vstv %s195_s10  ;;  %v181_v17 = vadd.f32 %v460_v14, %v170_v12  ;;  %vm189_vm11 = vmand %vm186_vm9, %vm188_vm10  ;;  %vm199_vm13 = vcmp.eq.s32.totalorder %v154_v4, %v198_v16 }
  0x2d   : > { %vm197_vm12 = vcmp.eq.s32.totalorder %v152_v3, %v196_v15  ;;  %v461_v18 = vsel %vm189_vm11, 1.0, %v538_v2 }
  0x2e   : > { %vm200_vm14 = vmand %vm197_vm12, %vm199_vm13  ;;  %v192_v19 = vadd.f32 %v461_v18, %v181_v17 }
  0x2f   : > { %v462_v20 = vsel %vm200_vm14, 1.0, %v538_v2 }
  0x30   : > { %v203_v21 = vadd.f32 %v462_v20, %v192_v19 }
  0x32   : > { %v205_v22 = vsel %vm204_vm15, %v203_v21, 0.0 }
  0x33   : > { %206 = vadd.xlane.f32.xlu0 %v205_v22 }
  0x49   : > { %229 = vperm.xlu0 %498, %v226_v23  }
  0xc0   : > { %v207_v24 = vpop.xlane.xlu0 %206 }
  0xc1   : > { %v209_v25 = vmax.f32 %v207_v24, 1.0  ;;  %vm208_vm1 = vcmp.gt.f32.partialorder %v207_v24, 0.0 }
  0xc3   : > { %499 = vrsqrt.f32 %v209_v25 }
  0xc8   : > { %v230_v27 = vpop.permute.xlu0 %229 }
  0xc9   : > { %v236_v28 = vmul.f32 %v463_v26, %v230_v27 }
  0xcb   : > { %476 = vmatpush3.msra.mxu0 %v236_v28 }
  0xcd   : > { %v500_v29 = vpop.eup %499 }
  0xce   : > { %v211_v30 = vsel %vm208_vm1, %v500_v29, 0.0 }
  0xcf   : > { %v212_v31 = vmul.f32 %v457_v7, %v211_v30  ;;  %v220_v39 = vmul.f32 %v211_v30, %v203_v21 }
  0xd1   : > { %v213_v32 = vsel %vm204_vm15, %v212_v31, 0.0 }
  0xd2   : > { %v214_v33 = vrot.slane %v213_v32, 4 }
  0xd4   : > { %v215_v34 = vadd.f32 %v214_v33, %v213_v32 }
  0xd6   : > { %v216_v35 = vrot.slane %v215_v34, 2 }
  0xd8   : > { %v217_v36 = vadd.f32 %v216_v35, %v215_v34 }
  0xda   : > { %v218_v37 = vrot.slane %v217_v36, 1 }
  0xdc   : > { %v219_v38 = vadd.f32 %v218_v37, %v217_v36 }
  0xde   : > { %v221_v40 = vmul.f32 %v220_v39, %v219_v38 }
  0xe0   : > { %478 = vmatmul.mubr.msk.f32.vlgmr.msra.gmra.mrb[0].mxu0 %vm204_vm15, %v221_v40 }
 0x1b3   : > { %v310_v42 = vpop.f32.mrb[0].mxu0 }
 0x1b4   : > { %v311_v44 = vadd.f32 %v464_v41, %v310_v42  ;;  %v479_v45 = vpop.f32.mrb[1].mxu0 }
 0x1b6   : > { %v318_v46 = vmul.f32 %v466_v43, %v311_v44 }
 0x1b8   : > { %481 = vmatpush3.msra.mxu1 %v318_v46 }
 0x1b9   : > { %483 = vmatmul.mubr.msk.f32.vlgmr.msra.gmra.mrb[0].mxu1 %vm204_vm15, %v221_v40 }
 0x28c   : > { %v385_v47 = vpop.f32.mrb[0].mxu1 }
 0x28d   : > { %389 = vadd.xlane.f32.xlu1 %v385_v47  ;;  %v484_v48 = vpop.f32.mrb[1].mxu1 }
 0x31a   : > { %v390_v50 = vpop.xlane.xlu1 %389 }
 0x31b   : > { %v395_v51 = vadd.f32 %v468_v49, %v390_v50 }
 0x31d   : > { %396 = vst [vmem:[%s150_s25] sm:$0xff] %v395_v51 }
 0x31e PF: > { %s24_s1 = sadd.s32 1, %s533_s1  }
 0x31f   : > { %p21_p0 = scmp.ge.s32.totalorder %s24_s1, 6  }
 0x321   :  { %23 = sbr.rel (!%p21_p0) target bundleno = 26 (0x1a), region = 58 }

</bundles_post_ra>
